<compile_context>
chip_gen: v6e
topology: v6e:2x2x1
jax: 0.10.0
libtpu: 0.0.40
codegen_flags: <defaults>
</compile_context>

<pallas_src>
import functools
import math

import jax
import jax.numpy as jnp
from jax import lax
from jax.experimental import pallas as pl
from jax.experimental.pallas import tpu as pltpu


def build_pos_encoding_table(max_len: int, embedding_dim: int,
                             dtype=jnp.float32):
    """Equivalent of the PyTorch register_buffer('pos_encoding', ...)."""
    position = jnp.arange(max_len, dtype=jnp.float32)[:, None]          # [L, 1]
    div_term = jnp.exp(
        -math.log(10000.0)
        * jnp.arange(0, embedding_dim, 2, dtype=jnp.float32) / embedding_dim
    )                                                                    # [D/2]
    angles = position * div_term                                         # [L, D/2]
    pe = jnp.zeros((max_len, embedding_dim), dtype=jnp.float32)
    pe = pe.at[:, 0::2].set(jnp.sin(angles))
    pe = pe.at[:, 1::2].set(jnp.cos(angles))
    return pe.astype(dtype)


def pad_table_lane_dense(table):
    """Pad the feature axis up to a multiple of 128 ONCE at init time.

    Doing this at buffer-build time keeps the jitted forward from
    re-materializing the whole [L, D_pad] table in HBM on every call.
    """
    _, dim = table.shape
    dim_pad = ((dim + 127) // 128) * 128
    if dim_pad != dim:
        table = jnp.pad(table, ((0, 0), (0, dim_pad - dim)))
    return table


def _gather_kernel(t_ref, table_ref, o_ref):
    """Single-step gather: table resident in VMEM, timesteps in SMEM.

    o[i, :] = table[clamp(t[i]), :] for all batch rows, written into one
    lane-dense [B, D_pad] output block.  Dropout(p=0.1) eval mode -> identity.
    """
    max_len = table_ref.shape[0]
    batch = o_ref.shape[0]

    def gather_row(i, carry):
        # Clamp defensively: an OOB timestep would otherwise silently read
        # table-adjacent VMEM (PyTorch would raise an index error).
        idx = jnp.clip(t_ref[i], 0, max_len - 1)
        o_ref[pl.ds(i, 1), :] = table_ref[pl.ds(idx, 1), :]
        return carry

    # Short, fixed trip count -> fully unroll for LLO scheduler visibility.
    lax.fori_loop(0, batch, gather_row, 0, unroll=(batch <= 64))


@functools.partial(jax.jit, static_argnames=("out_dim",))
def positional_encoding_forward(t, table, out_dim=None):
    """Pallas forward: returns table[t][:, :out_dim] with shape [B, out_dim].

    `t` may be shaped [B] or [B, 1] (matching the PyTorch `.squeeze(1)`).
    `table` must already be lane-dense (last dim a multiple of 128); use
    pad_table_lane_dense() once at init.
    """
    t_flat = jnp.asarray(t).reshape(-1).astype(jnp.int32)
    batch = t_flat.shape[0]
    _, dim_pad = table.shape
    assert dim_pad % 128 == 0, (
        "pad the table with pad_table_lane_dense() at init time")

    out = pl.pallas_call(
        _gather_kernel,
        out_shape=jax.ShapeDtypeStruct((batch, dim_pad), table.dtype),
        in_specs=[
            # Timestep indices: scalars in SMEM.
            pl.BlockSpec(memory_space=pltpu.MemorySpace.SMEM),
            # Whole sin/cos table resident in VMEM (~1 MiB: fits every gen).
            pl.BlockSpec(memory_space=pltpu.MemorySpace.VMEM),
        ],
        out_specs=pl.BlockSpec(memory_space=pltpu.MemorySpace.VMEM),
    )(t_flat, table)

    if out_dim is not None and out_dim != dim_pad:
        out = out[:, :out_dim]
    return out


if __name__ == "__main__":
    key = jax.random.PRNGKey(0)

    # Small shapes consistent with the module: DDIM-style time embedding.
    embedding_dim = 256      # multiple of 128 -> lane-dense, no padding needed
    max_len = 1000           # total noise steps
    batch = 8

    t = jax.random.randint(key, (batch,), 0, max_len, dtype=jnp.int32)

    pos_encoding = build_pos_encoding_table(max_len, embedding_dim)
    pos_encoding_padded = pad_table_lane_dense(pos_encoding)   # no-op for 256

    y = positional_encoding_forward(t, pos_encoding_padded, out_dim=embedding_dim)
    jax.block_until_ready(y)

    # Pure-JAX reference: forward() is just a gather of precomputed rows.
    y_ref = pos_encoding[t]
    assert y.shape == (batch, embedding_dim)
    assert jnp.array_equal(y, y_ref)

    # Also check the [B, 1]-shaped timestep input path (matches .squeeze(1)).
    y2 = positional_encoding_forward(t.reshape(batch, 1), pos_encoding_padded,
                                     out_dim=embedding_dim)
    jax.block_until_ready(y2)
    assert y2.shape == (batch, embedding_dim)
    assert jnp.array_equal(y2, y_ref)

    # Non-128-multiple feature dim: exercises init-time padding + final slice.
    dim2 = 192
    pe2 = build_pos_encoding_table(max_len, dim2)
    pe2_padded = pad_table_lane_dense(pe2)
    y3 = positional_encoding_forward(t, pe2_padded, out_dim=dim2)
    jax.block_until_ready(y3)
    assert y3.shape == (batch, dim2)
    assert jnp.array_equal(y3, pe2[t])

    print("KERNEL_OK")
</pallas_src>

<mosaic_0001>
module attributes {stable_mosaic.version = 11 : i64} {
  func.func @_gather_kernel(%arg0: memref<8xi32, #tpu.memory_space<smem>>, %arg1: memref<1000x256xf32, #tpu.memory_space<vmem>>, %arg2: memref<8x256xf32, #tpu.memory_space<vmem>>) attributes {dimension_semantics = [], scalar_prefetch = 0 : i64, scratch_operands = 0 : i64, tpu.core_type = #tpu.core_type<tc>} {
    %c0_i32 = arith.constant 0 : i32
    %0 = arith.index_cast %c0_i32 : i32 to index
    %1 = memref.load %arg0[%0] : memref<8xi32, #tpu.memory_space<smem>>
    %c0_i32_0 = arith.constant 0 : i32
    %c999_i32 = arith.constant 999 : i32
    %2 = arith.maxsi %c0_i32_0, %1 : i32
    %3 = arith.minsi %c999_i32, %2 : i32
    %4 = arith.index_cast %3 : i32 to index
    %c0 = arith.constant 0 : index
    %5 = vector.load %arg1[%4, %c0] : memref<1000x256xf32, #tpu.memory_space<vmem>>, vector<1x256xf32>
    %6 = arith.index_cast %c0_i32 : i32 to index
    %c0_1 = arith.constant 0 : index
    %7 = vector.load %arg2[%6, %c0_1] : memref<8x256xf32, #tpu.memory_space<vmem>>, vector<1x256xf32>
    tpu.vector_store %arg2[%6, %c0_1], %5 {strides = array<i32>} : memref<8x256xf32, #tpu.memory_space<vmem>>, vector<1x256xf32>,
    %c1_i32 = arith.constant 1 : i32
    %8 = arith.index_cast %c1_i32 : i32 to index
    %9 = memref.load %arg0[%8] : memref<8xi32, #tpu.memory_space<smem>>
    %c0_i32_2 = arith.constant 0 : i32
    %c999_i32_3 = arith.constant 999 : i32
    %10 = arith.maxsi %c0_i32_2, %9 : i32
    %11 = arith.minsi %c999_i32_3, %10 : i32
    %12 = arith.index_cast %11 : i32 to index
    %c0_4 = arith.constant 0 : index
    %13 = vector.load %arg1[%12, %c0_4] : memref<1000x256xf32, #tpu.memory_space<vmem>>, vector<1x256xf32>
    %14 = arith.index_cast %c1_i32 : i32 to index
    %c0_5 = arith.constant 0 : index
    %15 = vector.load %arg2[%14, %c0_5] : memref<8x256xf32, #tpu.memory_space<vmem>>, vector<1x256xf32>
    tpu.vector_store %arg2[%14, %c0_5], %13 {strides = array<i32>} : memref<8x256xf32, #tpu.memory_space<vmem>>, vector<1x256xf32>,
    %c2_i32 = arith.constant 2 : i32
    %16 = arith.index_cast %c2_i32 : i32 to index
    %17 = memref.load %arg0[%16] : memref<8xi32, #tpu.memory_space<smem>>
    %c0_i32_6 = arith.constant 0 : i32
    %c999_i32_7 = arith.constant 999 : i32
    %18 = arith.maxsi %c0_i32_6, %17 : i32
    %19 = arith.minsi %c999_i32_7, %18 : i32
    %20 = arith.index_cast %19 : i32 to index
    %c0_8 = arith.constant 0 : index
    %21 = vector.load %arg1[%20, %c0_8] : memref<1000x256xf32, #tpu.memory_space<vmem>>, vector<1x256xf32>
    %22 = arith.index_cast %c2_i32 : i32 to index
    %c0_9 = arith.constant 0 : index
    %23 = vector.load %arg2[%22, %c0_9] : memref<8x256xf32, #tpu.memory_space<vmem>>, vector<1x256xf32>
    tpu.vector_store %arg2[%22, %c0_9], %21 {strides = array<i32>} : memref<8x256xf32, #tpu.memory_space<vmem>>, vector<1x256xf32>,
    %c3_i32 = arith.constant 3 : i32
    %24 = arith.index_cast %c3_i32 : i32 to index
    %25 = memref.load %arg0[%24] : memref<8xi32, #tpu.memory_space<smem>>
    %c0_i32_10 = arith.constant 0 : i32
    %c999_i32_11 = arith.constant 999 : i32
    %26 = arith.maxsi %c0_i32_10, %25 : i32
    %27 = arith.minsi %c999_i32_11, %26 : i32
    %28 = arith.index_cast %27 : i32 to index
    %c0_12 = arith.constant 0 : index
    %29 = vector.load %arg1[%28, %c0_12] : memref<1000x256xf32, #tpu.memory_space<vmem>>, vector<1x256xf32>
    %30 = arith.index_cast %c3_i32 : i32 to index
    %c0_13 = arith.constant 0 : index
    %31 = vector.load %arg2[%30, %c0_13] : memref<8x256xf32, #tpu.memory_space<vmem>>, vector<1x256xf32>
    tpu.vector_store %arg2[%30, %c0_13], %29 {strides = array<i32>} : memref<8x256xf32, #tpu.memory_space<vmem>>, vector<1x256xf32>,
    %c4_i32 = arith.constant 4 : i32
    %32 = arith.index_cast %c4_i32 : i32 to index
    %33 = memref.load %arg0[%32] : memref<8xi32, #tpu.memory_space<smem>>
    %c0_i32_14 = arith.constant 0 : i32
    %c999_i32_15 = arith.constant 999 : i32
    %34 = arith.maxsi %c0_i32_14, %33 : i32
    %35 = arith.minsi %c999_i32_15, %34 : i32
    %36 = arith.index_cast %35 : i32 to index
    %c0_16 = arith.constant 0 : index
    %37 = vector.load %arg1[%36, %c0_16] : memref<1000x256xf32, #tpu.memory_space<vmem>>, vector<1x256xf32>
    %38 = arith.index_cast %c4_i32 : i32 to index
    %c0_17 = arith.constant 0 : index
    %39 = vector.load %arg2[%38, %c0_17] : memref<8x256xf32, #tpu.memory_space<vmem>>, vector<1x256xf32>
    tpu.vector_store %arg2[%38, %c0_17], %37 {strides = array<i32>} : memref<8x256xf32, #tpu.memory_space<vmem>>, vector<1x256xf32>,
    %c5_i32 = arith.constant 5 : i32
    %40 = arith.index_cast %c5_i32 : i32 to index
    %41 = memref.load %arg0[%40] : memref<8xi32, #tpu.memory_space<smem>>
    %c0_i32_18 = arith.constant 0 : i32
    %c999_i32_19 = arith.constant 999 : i32
    %42 = arith.maxsi %c0_i32_18, %41 : i32
    %43 = arith.minsi %c999_i32_19, %42 : i32
    %44 = arith.index_cast %43 : i32 to index
    %c0_20 = arith.constant 0 : index
    %45 = vector.load %arg1[%44, %c0_20] : memref<1000x256xf32, #tpu.memory_space<vmem>>, vector<1x256xf32>
    %46 = arith.index_cast %c5_i32 : i32 to index
    %c0_21 = arith.constant 0 : index
    %47 = vector.load %arg2[%46, %c0_21] : memref<8x256xf32, #tpu.memory_space<vmem>>, vector<1x256xf32>
    tpu.vector_store %arg2[%46, %c0_21], %45 {strides = array<i32>} : memref<8x256xf32, #tpu.memory_space<vmem>>, vector<1x256xf32>,
    %c6_i32 = arith.constant 6 : i32
    %48 = arith.index_cast %c6_i32 : i32 to index
    %49 = memref.load %arg0[%48] : memref<8xi32, #tpu.memory_space<smem>>
    %c0_i32_22 = arith.constant 0 : i32
    %c999_i32_23 = arith.constant 999 : i32
    %50 = arith.maxsi %c0_i32_22, %49 : i32
    %51 = arith.minsi %c999_i32_23, %50 : i32
    %52 = arith.index_cast %51 : i32 to index
    %c0_24 = arith.constant 0 : index
    %53 = vector.load %arg1[%52, %c0_24] : memref<1000x256xf32, #tpu.memory_space<vmem>>, vector<1x256xf32>
    %54 = arith.index_cast %c6_i32 : i32 to index
    %c0_25 = arith.constant 0 : index
    %55 = vector.load %arg2[%54, %c0_25] : memref<8x256xf32, #tpu.memory_space<vmem>>, vector<1x256xf32>
    tpu.vector_store %arg2[%54, %c0_25], %53 {strides = array<i32>} : memref<8x256xf32, #tpu.memory_space<vmem>>, vector<1x256xf32>,
    %c7_i32 = arith.constant 7 : i32
    %56 = arith.index_cast %c7_i32 : i32 to index
    %57 = memref.load %arg0[%56] : memref<8xi32, #tpu.memory_space<smem>>
    %c0_i32_26 = arith.constant 0 : i32
    %c999_i32_27 = arith.constant 999 : i32
    %58 = arith.maxsi %c0_i32_26, %57 : i32
    %59 = arith.minsi %c999_i32_27, %58 : i32
    %60 = arith.index_cast %59 : i32 to index
    %c0_28 = arith.constant 0 : index
    %61 = vector.load %arg1[%60, %c0_28] : memref<1000x256xf32, #tpu.memory_space<vmem>>, vector<1x256xf32>
    %62 = arith.index_cast %c7_i32 : i32 to index
    %c0_29 = arith.constant 0 : index
    %63 = vector.load %arg2[%62, %c0_29] : memref<8x256xf32, #tpu.memory_space<vmem>>, vector<1x256xf32>
    tpu.vector_store %arg2[%62, %c0_29], %61 {strides = array<i32>} : memref<8x256xf32, #tpu.memory_space<vmem>>, vector<1x256xf32>,
    %c8_i32 = arith.constant 8 : i32
    return
  }
}

</mosaic_0001>

<bundles_post_ra>
// kernel: positional_encoding_forward.1
= control target key start
LH: loop header
LB: loop body
LE: loop exit
PB: predicated region body
PF: predicated region fallthrough
CT: control target
= control target key end

     0   :  { %7 = vsyncpa [#allocation5], 0  ;;  %s443_s0 = inlined_call_operand.hbm [shape: s32[8], index: 0, kind: input, shape index: {}]   ;;  %s444_s1 = inlined_call_operand.hbm [shape: f32[1000,256], index: 1, kind: input, shape index: {}]   ;;  %s445_s2 = inlined_call_operand.hbm [shape: f32[8,256], index: 2, kind: output, shape index: {}]  }
   0x1   :  { %8 = vsyncpa [#allocation3], 0 }
   0x2   :  { %9 = vsyncpa [#allocation4], 0  ;;  %s362_s9 = smov [#allocation2]   ;;  %s363_s12 = smov [#allocation6]  }
   0x3   :  { %17 = dma.hbm_to_smem %s443_s0, 16, %s362_s9, [#allocation5]  }
   0x4   :  { %s23_s13 = sshll.u32 %s363_s12, 4  ;;  %s24_s13 = int_to_ptr.vmem [resolvable:$true] %s23_s13 }
   0x5   :  { %s324_s14 = scalar_lea.vmem %s24_s13, 32000  ;;  %p329_p1 = scmp.lt.s32.totalorder %s24_s13, %s24_s13 }
   0x6   :  { %p325_p0 = scmp.ne.s32.totalorder %s24_s13, %s324_s14  ;;  %p330_p2 = scmp.lt.s32.totalorder %s324_s14, %s324_s14 }
   0x8   :  { %p331_p3 = por %p330_p2, %p329_p1 }
   0xa   :  { %p332_p4 = pnand %p331_p3, %p325_p0 }
   0xc   :  { %335 = shalt.err (!%p332_p4)
}
   0xd   :  { %s364_s15 = smov 256   ;;  %s365_s16 = smov 16  }
   0xe   :  { %29 = dma.hbm_to_vmem [thread:$0]  %s444_s1, 32000, %s24_s13, [#allocation3], %s364_s15, %s364_s15, %s365_s16  }
   0xf   :  { %356 = dma.done.wait [#allocation5], 16  }
  0x10   :  { %357 = vsyncadd [#allocation5], 4294967280 }
  0x11   :  { %358 = dma.done.wait [#allocation3], 32000  }
  0x12   :  { %359 = vsyncadd [#allocation3], 4294935296 }
  0x13   :  { %36 = sfence }
  0x14   :  { %s37_s0 = sld [smem:[#allocation2]]  ;;  %v51_v0 = vlaneseq }
  0x15   :  { %s223_s19 = sld [smem:[#allocation2 + $0x1]] }
  0x16   :  { %s388_s20 = sld [smem:[#allocation2 + $0x2]]  ;;  %vm396_vm0 = vcmp.lt.s32.totalorder %v51_v0, 256 }
  0x17   :  { %s390_s21 = sld [smem:[#allocation2 + $0x3]] }
  0x18   :  { %s392_s22 = sld [smem:[#allocation2 + $0x4]] }
  0x19   :  { %s394_s23 = sld [smem:[#allocation2 + $0x5]] }
  0x1a   :  { %p38_p5 = scmp.gt.s32.totalorder %s37_s0, 0  ;;  %p216_p6 = scmp.lt.s32.totalorder %s37_s0, 999 }
  0x1b   :  { %p58_p7 = scmp.gt.s32.totalorder %s223_s19, 0  ;;  %p224_p8 = scmp.lt.s32.totalorder %s223_s19, 999 }
  0x1c   :  { %s449_s0 = smov (!%p38_p5, %s37_s0), 0  ;;  %p75_p9 = scmp.gt.s32.totalorder %s388_s20, 0 }
  0x1d   :  { %s451_s19 = smov (!%p58_p7, %s223_s19), 0  ;;  %s453_s0 = smov (!%p216_p6, %s449_s0), 999 }
  0x1e   :  { %s455_s19 = smov (!%p224_p8, %s451_s19), 999  ;;  %s42_s1 = sshra.s32 %s453_s0, 3 }
  0x1f   :  { %s45_s24 = sand.u32 7, %s453_s0  ;;  %s281_s25 = sshll.u32 %s42_s1, 4 }
  0x20   :  { %s62_s26 = sshra.s32 %s455_s19, 3  ;;  %s48_s27 = sadd.s32 %s281_s25, %s45_s24 }
  0x21   :  { %s65_s28 = sand.u32 7, %s455_s19  ;;  %s284_s29 = sshll.u32 %s62_s26, 4 }
  0x22   :  { %s49_s30 = scalar_lea.vmem [#allocation6], %s48_s27  ;;  %s68_s3 = sadd.s32 %s284_s29, %s65_s28 }
  0x23   :  { %v50_v2 = vld [vmem:[%s49_s30] ss:$8 sm:$0x3]  ;;  %p232_p10 = scmp.lt.s32.totalorder %s388_s20, 999  ;;  %s69_s4 = scalar_lea.vmem [#allocation6], %s68_s3 }
  0x24   :  { %55 = vst.msk [vmem:[#allocation7] ss:$8 sm:$0x3] %vm396_vm0, %v50_v2  ;;  %v70_v3 = vld [vmem:[%s69_s4] ss:$8 sm:$0x3] }
  0x25   :  { %s457_s20 = smov (!%p75_p9, %s388_s20), 0  ;;  %72 = vst.msk [vmem:[#allocation7 + $0x1] ss:$8 sm:$0x3] %vm396_vm0, %v70_v3  ;;  %p92_p11 = scmp.gt.s32.totalorder %s390_s21, 0 }
  0x26   :  { %p240_p12 = scmp.lt.s32.totalorder %s390_s21, 999  ;;  %s459_s20 = smov (!%p232_p10, %s457_s20), 999 }
  0x27   :  { %s461_s21 = smov (!%p92_p11, %s390_s21), 0  ;;  %s79_s5 = sshra.s32 %s459_s20, 3 }
  0x28   :  { %s82_s6 = sand.u32 7, %s459_s20  ;;  %s287_s7 = sshll.u32 %s79_s5, 4 }
  0x29   :  { %p109_p13 = scmp.gt.s32.totalorder %s392_s22, 0  ;;  %s85_s8 = sadd.s32 %s287_s7, %s82_s6 }
  0x2a   :  { %p248_p0 = scmp.lt.s32.totalorder %s392_s22, 999  ;;  %p126_p1 = scmp.gt.s32.totalorder %s394_s23, 0 }
  0x2b   :  { %s86_s9 = scalar_lea.vmem [#allocation6], %s85_s8  ;;  %s463_s21 = smov (!%p240_p12, %s461_s21), 999 }
  0x2c   :  { %v87_v4 = vld [vmem:[%s86_s9] ss:$8 sm:$0x3]  ;;  %s110_s10 = scalar_select %p109_p13, %s392_s22, 0 }
  0x2d   :  { %89 = vst.msk [vmem:[#allocation7 + $0x2] ss:$8 sm:$0x3] %vm396_vm0, %v87_v4  ;;  %s96_s11 = sshra.s32 %s463_s21, 3  ;;  %s99_s12 = sand.u32 7, %s463_s21 }
  0x2e   :  { %s290_s13 = sshll.u32 %s96_s11, 4  ;;  %p256_p2 = scmp.lt.s32.totalorder %s394_s23, 999 }
  0x2f   :  { %s102_s14 = sadd.s32 %s290_s13, %s99_s12  ;;  %s263_s15 = sld [smem:[#allocation2 + $0x6]] }
  0x30   :  { %s417_s16 = sld [smem:[#allocation2 + $0x7]]  ;;  %s103_s17 = scalar_lea.vmem [#allocation6], %s102_s14 }
  0x31   :  { %v104_v5 = vld [vmem:[%s103_s17] ss:$8 sm:$0x3]  ;;  %s465_s10 = smov (!%p248_p0, %s110_s10), 999  ;;  %s366_s5 = smov [#allocation7]  }
  0x32   :  { %106 = vst.msk [vmem:[#allocation7 + $0x3] ss:$8 sm:$0x3] %vm396_vm0, %v104_v5  ;;  %s127_s18 = scalar_select %p126_p1, %s394_s23, 0 }
  0x33   :  { %s113_s0 = sshra.s32 %s465_s10, 3  ;;  %s116_s19 = sand.u32 7, %s465_s10 }
  0x34   :  { %s293_s20 = sshll.u32 %s113_s0, 4  ;;  %s467_s18 = smov (!%p256_p2, %s127_s18), 999 }
  0x35   :  { %s119_s21 = sadd.s32 %s293_s20, %s116_s19  ;;  %p143_p3 = scmp.gt.s32.totalorder %s263_s15, 0 }
  0x36   :  { %p264_p4 = scmp.lt.s32.totalorder %s263_s15, 999  ;;  %s120_s1 = scalar_lea.vmem [#allocation6], %s119_s21 }
  0x37   :  { %v121_v6 = vld [vmem:[%s120_s1] ss:$8 sm:$0x3]  ;;  %s144_s22 = scalar_select %p143_p3, %s263_s15, 0 }
  0x38   :  { %123 = vst.msk [vmem:[#allocation7 + $0x4] ss:$8 sm:$0x3] %vm396_vm0, %v121_v6  ;;  %s130_s24 = sshra.s32 %s467_s18, 3  ;;  %s133_s25 = sand.u32 7, %s467_s18 }
  0x39   :  { %s296_s26 = sshll.u32 %s130_s24, 4  ;;  %p160_p5 = scmp.gt.s32.totalorder %s417_s16, 0 }
  0x3a   :  { %s136_s27 = sadd.s32 %s296_s26, %s133_s25  ;;  %p272_p6 = scmp.lt.s32.totalorder %s417_s16, 999 }
  0x3b   :  { %s137_s28 = scalar_lea.vmem [#allocation6], %s136_s27  ;;  %s469_s22 = smov (!%p264_p4, %s144_s22), 999 }
  0x3c   :  { %v138_v7 = vld [vmem:[%s137_s28] ss:$8 sm:$0x3]  ;;  %s471_s16 = smov (!%p160_p5, %s417_s16), 0  ;;  %s147_s23 = sshra.s32 %s469_s22, 3 }
  0x3d   :  { %140 = vst.msk [vmem:[#allocation7 + $0x5] ss:$8 sm:$0x3] %vm396_vm0, %v138_v7  ;;  %s150_s29 = sand.u32 7, %s469_s22  ;;  %s299_s30 = sshll.u32 %s147_s23, 4 }
  0x3e   :  { %s153_s3 = sadd.s32 %s299_s30, %s150_s29  ;;  %s473_s16 = smov (!%p272_p6, %s471_s16), 999 }
  0x3f   :  { %s154_s4 = scalar_lea.vmem [#allocation6], %s153_s3  ;;  %s182_s6 = sshll.u32 %s366_s5, 4  ;;  %s183_s6 = int_to_ptr.vmem [resolvable:$true] %s182_s6 }
  0x40   :  { %v155_v8 = vld [vmem:[%s154_s4] ss:$8 sm:$0x3]  ;;  %s164_s7 = sshra.s32 %s473_s16, 3  ;;  %s167_s8 = sand.u32 7, %s473_s16 }
  0x41   :  { %157 = vst.msk [vmem:[#allocation7 + $0x6] ss:$8 sm:$0x3] %vm396_vm0, %v155_v8  ;;  %s302_s9 = sshll.u32 %s164_s7, 4  ;;  %s336_s12 = scalar_lea.vmem %s183_s6, 256 }
  0x42   :  { %s170_s10 = sadd.s32 %s302_s9, %s167_s8  ;;  %p337_p7 = scmp.ne.s32.totalorder %s183_s6, %s336_s12 }
  0x43   :  { %s171_s11 = scalar_lea.vmem [#allocation6], %s170_s10  ;;  %p341_p8 = scmp.lt.s32.totalorder %s183_s6, %s183_s6 }
  0x44   :  { %v172_v9 = vld [vmem:[%s171_s11] ss:$8 sm:$0x3]  ;;  %p342_p9 = scmp.lt.s32.totalorder %s336_s12, %s336_s12 }
  0x45   :  { %174 = vst.msk [vmem:[#allocation7 + $0x7] ss:$8 sm:$0x3] %vm396_vm0, %v172_v9 }
  0x46   :  { %p343_p10 = por %p342_p9, %p341_p8 }
  0x48   :  { %p344_p11 = pnand %p343_p10, %p337_p7 }
  0x4a   :  { %347 = shalt.err (!%p344_p11)
}
  0x4b   :  { %185 = dma.vmem_to_hbm [thread:$0]  %s183_s6, 256, %s445_s2, [#allocation4]  }
  0x4c   :  { %360 = dma.done.wait [#allocation4], 256  }
  0x4d   :  { %361 = vsyncadd [#allocation4], 4294967040 }
  0x4e   :  { %189 = vsyncpa [#allocation3], 1 }
  0x4f   :  { %190 = vsyncpa [#allocation4], 1 }
  0x50   :  { %191 = vsyncpa [#allocation5], 1 }

</bundles_post_ra>
